<compile_context>
chip_gen: v5e
topology: v5e:2x2
jax: 0.10.0
libtpu: 0.0.40
codegen_flags: <defaults>
</compile_context>

<pallas_src>
import numpy as np
import jax
import jax.numpy as jnp
from jax.experimental import pallas as pl
from jax.experimental.pallas import tpu as pltpu

# ---------------- model config (mirrors NonLinearRE.__init__) ----------------
INPUT_EMB    = 32                     # input_emb_size
POS_EMB      = 8                      # pos_emb_size
LINE_EMB     = 8                      # line_emb_size
MAX_SENTS    = 10
MAX_STEP_GAP = 5
CONTEXT_DIMS = 100                    # self.context_dims
HIDDEN       = 100                    # MLP arch=[100]
LABEL2ID     = {"no_rel": 0, "uses": 1, "produces": 2}
NB_CLASSES   = len(LABEL2ID)
MAX_CTX_LEN  = 50                     # max_seq_len inside avg_entities
FCN_IN       = (INPUT_EMB + POS_EMB) * 2 + LINE_EMB + CONTEXT_DIMS   # 188
PAIR_FEAT    = 2 * POS_EMB + LINE_EMB                                # 24
RHS_W        = INPUT_EMB + CONTEXT_DIMS + 1                          # 133
OUT_PAD      = 128                    # lane-dense output width


# ------------------------------- Pallas kernel -------------------------------
def nonlinear_re_kernel(emb_ref, masks_ref, pairfeat_ref,
                        qv_w_ref, qv_b_ref, w1_ref, w2_ref, out_ref):
    f32 = jnp.float32
    D, C = INPUT_EMB, CONTEXT_DIMS
    P = pairfeat_ref.shape[0]                       # padded pair count (multiple of 8)

    emb = emb_ref[...]                              # (S, D)

    # --- fused value/score projection: one MXU push (qv_w = [v_w | q_w]) ---
    sv = jnp.dot(emb, qv_w_ref[...], preferred_element_type=f32) + qv_b_ref[...]  # (S, C+1)
    values = sv[:, 0:C]                             # (S, C)
    scores = sv[:, C:C + 1]                         # (S, 1)

    # global softmax shift: cancels exactly in the numer/denom ratio.
    m = jnp.max(scores, axis=0, keepdims=True)
    es = jnp.exp(scores - m)                        # (S, 1)

    # --- ONE stacked mask matmul: [mask_a; mask_b; ctx_mask] @ [emb | es*v | es] ---
    rhs = jnp.concatenate([emb, es * values, es], axis=1)                  # (S, 133)
    big = jnp.dot(masks_ref[...], rhs, preferred_element_type=f32)         # (3P, 133)

    avg_a = big[0:P, 0:D]                           # masks pre-normalised -> this is the mean
    avg_b = big[P:2 * P, 0:D]
    numer = big[2 * P:3 * P, D:D + C]
    denom = big[2 * P:3 * P, D + C:D + C + 1]
    # empty context window -> denom == 0 -> clamp -> ctx_agg = 0 (torch would give NaN)
    ctx_agg = numer * pl.reciprocal(jnp.maximum(denom, 1e-30), approx=True)

    # --- fcn MLP (bias=False, tanh; dropout=identity in eval): single matmul ---
    # w1 rows are permuted host-side to match [avg_a | avg_b | ctx | pos_a | pos_b | line].
    x = jnp.concatenate([avg_a, avg_b, ctx_agg, pairfeat_ref[...]], axis=1)  # (P, 188)
    h = jnp.tanh(jnp.dot(x, w1_ref[...], preferred_element_type=f32))       # (P, HIDDEN)
    out_ref[...] = jnp.dot(h, w2_ref[...], preferred_element_type=f32)      # (P, 128) lane-dense


# ------------------------ one-time weight packing (host) ---------------------
def prepare_params(params):
    f32 = jnp.float32
    qv_w = jnp.concatenate([params["v_w"], params["q_w"]], axis=1)    # (D, C+1)
    qv_b = jnp.concatenate([params["v_b"], params["q_b"]], axis=1)    # (1, C+1)
    w1 = params["w1"]
    # original w1 row blocks: [avg_a | pos_a | avg_b | pos_b | line | ctx]
    o = np.cumsum([0, INPUT_EMB, POS_EMB, INPUT_EMB, POS_EMB, LINE_EMB, CONTEXT_DIMS])
    w1_perm = jnp.concatenate(
        [w1[o[0]:o[1]], w1[o[2]:o[3]], w1[o[5]:o[6]],       # avg_a, avg_b, ctx
         w1[o[1]:o[2]], w1[o[3]:o[4]], w1[o[4]:o[5]]],      # pos_a, pos_b, line
        axis=0)                                              # (188, HIDDEN)
    w2_pad = jnp.zeros((HIDDEN, OUT_PAD), f32).at[:, :NB_CLASSES].set(params["w2"])
    return {"pos_table": params["pos_table"], "line_table": params["line_table"],
            "qv_w": qv_w, "qv_b": qv_b, "w1": w1_perm, "w2": w2_pad}


# --------------------------------- forward -----------------------------------
@jax.jit
def nonlinear_re_forward(prep, tkn_embs, x_rels):
    """Returns (y_hat, ne_pairs) like the torch module (eval mode)."""
    f32 = jnp.float32
    S = tkn_embs.shape[0]
    P = x_rels.shape[0]
    P_pad = ((P + 7) // 8) * 8                       # sublane-aligned pair count

    x = x_rels.astype(jnp.int32)
    xp = jnp.zeros((P_pad, 8), jnp.int32).at[:P].set(x)
    a_s, a_e, a_sent, a_step = xp[:, 0], xp[:, 1], xp[:, 2], xp[:, 3]
    b_s, b_e, b_sent, b_step = xp[:, 4], xp[:, 5], xp[:, 6], xp[:, 7]

    t = jnp.arange(S)[None, :]
    # entity-span masks (inclusive ends, as embeddings[s:e+1]), row-normalised
    span_a = ((t >= a_s[:, None]) & (t <= a_e[:, None])).astype(f32)
    span_b = ((t >= b_s[:, None]) & (t <= b_e[:, None])).astype(f32)
    mask_a = span_a / jnp.maximum(jnp.sum(span_a, axis=1, keepdims=True), 1.0)
    mask_b = span_b / jnp.maximum(jnp.sum(span_b, axis=1, keepdims=True), 1.0)

    # context window: (a_end, b_start) if a_end <= b_start else (b_end, a_start),
    # length capped at MAX_CTX_LEN (matches embeddings[s : s + min(e-s, 50)])
    c_s = jnp.where(a_e <= b_s, a_e, b_e)
    c_e = jnp.where(a_e <= b_s, b_s, a_s)
    c_len = jnp.minimum(c_e - c_s, MAX_CTX_LEN)
    ctx_mask = ((t >= c_s[:, None]) & (t < (c_s + c_len)[:, None])).astype(f32)

    masks = jnp.concatenate([mask_a, mask_b, ctx_mask], axis=0)          # (3*P_pad, S)

    # nn.Embedding lookups (data-dependent gathers stay in jitted XLA glue)
    pos_a = jnp.take(prep["pos_table"], a_sent, axis=0)
    pos_b = jnp.take(prep["pos_table"], b_sent, axis=0)
    line = jnp.take(prep["line_table"], a_step - b_step + MAX_STEP_GAP, axis=0)
    pairfeat = jnp.concatenate([pos_a, pos_b, line], axis=1)             # (P_pad, 24)

    logits_pad = pl.pallas_call(
        nonlinear_re_kernel,
        out_shape=jax.ShapeDtypeStruct((P_pad, OUT_PAD), f32),
        in_specs=[pl.BlockSpec(memory_space=pltpu.MemorySpace.VMEM)] * 7,
        out_specs=pl.BlockSpec(memory_space=pltpu.MemorySpace.VMEM),
        # NOTE: single invocation (everything fits VMEM).  When batching many
        # sentences/pairs, add a grid over P-tiles with
        # dimension_semantics=("parallel",) so v7x's second TensorCore is used.
    )(tkn_embs.astype(f32), masks, pairfeat,
      prep["qv_w"], prep["qv_b"], prep["w1"], prep["w2"])

    logits = logits_pad[:P, :NB_CLASSES]
    return logits, x


# --------------------- pure-numpy reference (torch semantics) ----------------
def torch_style_reference(params, emb, x_rels):
    emb = np.asarray(emb, np.float32)
    x = np.asarray(x_rels)
    chunks = x.reshape(-1, 4)
    avg = np.stack([emb[s:e + 1].mean(axis=0) for s, e, _, _ in chunks])
    pairs = [(r[1], r[4]) if r[1] <= r[4] else (r[5], r[0]) for r in x.tolist()]
    D = emb.shape[1]
    ctx_list, mask_list = [], []
    for s, e in pairs:
        L = min(e - s, MAX_CTX_LEN)
        c = np.concatenate([emb[s:s + L], np.zeros((MAX_CTX_LEN - L, D), np.float32)], axis=0)
        ctx_list.append(c)
        mask_list.append(np.array([True] * L + [False] * (MAX_CTX_LEN - L)))
    ctx = np.stack(ctx_list)
    cmask = np.stack(mask_list)
    pos = np.asarray(params["pos_table"])[chunks[:, 2]]
    ne_pairs = chunks.reshape(-1, 8)
    line = np.asarray(params["line_table"])[ne_pairs[:, 3] - ne_pairs[:, 7] + MAX_STEP_GAP]
    qw, qb = np.asarray(params["q_w"]), np.asarray(params["q_b"])
    vw, vb = np.asarray(params["v_w"]), np.asarray(params["v_b"])
    sc = ctx @ qw + qb                                     # (P, 50, 1)
    sc = np.where(cmask[..., None], sc, -1e30)
    sc = sc - sc.max(axis=1, keepdims=True)
    ex = np.exp(sc) * cmask[..., None]
    attn = ex / ex.sum(axis=1, keepdims=True)
    vals = ctx @ vw + vb                                   # (P, 50, Cctx)
    ctx_agg = (attn * vals).sum(axis=1)                    # (P, Cctx)
    X = np.concatenate([avg, pos], axis=1).reshape(-1, 2 * (INPUT_EMB + POS_EMB))
    X = np.concatenate([X, line, ctx_agg], axis=1)
    h = np.tanh(X @ np.asarray(params["w1"]))
    return h @ np.asarray(params["w2"])


# ------------------------------ deterministic init ---------------------------
def init_params(key):
    ks = jax.random.split(key, 8)
    s = 0.1
    return {
        "pos_table":  jax.random.normal(ks[0], (MAX_SENTS + 1, POS_EMB), jnp.float32) * s,
        "line_table": jax.random.normal(ks[1], (2 * MAX_STEP_GAP + 1, LINE_EMB), jnp.float32) * s,
        "q_w": jax.random.normal(ks[2], (INPUT_EMB, 1), jnp.float32) * s,
        "q_b": jax.random.normal(ks[3], (1, 1), jnp.float32) * s,
        "v_w": jax.random.normal(ks[4], (INPUT_EMB, CONTEXT_DIMS), jnp.float32) * s,
        "v_b": jax.random.normal(ks[5], (1, CONTEXT_DIMS), jnp.float32) * s,
        "w1":  jax.random.normal(ks[6], (FCN_IN, HIDDEN), jnp.float32) * s,
        "w2":  jax.random.normal(ks[7], (HIDDEN, NB_CLASSES), jnp.float32) * s,
    }


if __name__ == "__main__":
    key = jax.random.PRNGKey(0)
    pkey, ekey = jax.random.split(key)
    params = init_params(pkey)
    prep = prepare_params(params)

    S = 64
    tkn_embs = jax.random.normal(ekey, (S, INPUT_EMB), jnp.float32)

    # x_rels rows: [a_start, a_end, a_sent, a_step, b_start, b_end, b_sent, b_step]
    e0 = (2, 4, 1, 2)
    e1 = (10, 13, 3, 4)
    e2 = (20, 24, 5, 1)
    x_rels = jnp.array([e0 + e1, e1 + e0, e0 + e2, e2 + e1], dtype=jnp.int32)   # (4, 8)

    logits, ne_pairs = nonlinear_re_forward(prep, tkn_embs, x_rels)
    logits = jax.block_until_ready(logits)

    ref = torch_style_reference(params, np.asarray(tkn_embs), np.asarray(x_rels))
    # tolerance relaxed vs exact-division version because the attention denominator
    # uses the EUP approximate reciprocal (pl.reciprocal(approx=True)).
    np.testing.assert_allclose(np.asarray(logits), ref, rtol=5e-3, atol=5e-3)
    print("KERNEL_OK")
</pallas_src>

<mosaic_0001>
module attributes {stable_mosaic.version = 11 : i64} {
  func.func @nonlinear_re_kernel(%arg0: memref<64x32xf32, #tpu.memory_space<vmem>>, %arg1: memref<24x64xf32, #tpu.memory_space<vmem>>, %arg2: memref<8x24xf32, #tpu.memory_space<vmem>>, %arg3: memref<32x101xf32, #tpu.memory_space<vmem>>, %arg4: memref<1x101xf32, #tpu.memory_space<vmem>>, %arg5: memref<188x100xf32, #tpu.memory_space<vmem>>, %arg6: memref<100x128xf32, #tpu.memory_space<vmem>>, %arg7: memref<8x128xf32, #tpu.memory_space<vmem>>) attributes {dimension_semantics = [], scalar_prefetch = 0 : i64, scratch_operands = 0 : i64, tpu.core_type = #tpu.core_type<tc>} {
    %c0 = arith.constant 0 : index
    %c0_0 = arith.constant 0 : index
    %0 = vector.load %arg0[%c0, %c0_0] : memref<64x32xf32, #tpu.memory_space<vmem>>, vector<64x32xf32>
    %c0_1 = arith.constant 0 : index
    %c0_2 = arith.constant 0 : index
    %1 = vector.load %arg3[%c0_1, %c0_2] : memref<32x101xf32, #tpu.memory_space<vmem>>, vector<32x101xf32>
    %cst = arith.constant dense<0.000000e+00> : vector<64x101xf32>
    %2 = tpu.matmul %0, %1, %cst {dimension_numbers = #tpu.dot_dimension_numbers<[1], [0], [0], [1], [0, 0, 1, 1], [], []>} : vector<64x32xf32>, vector<32x101xf32>, vector<64x101xf32> -> vector<64x101xf32>
    %c0_3 = arith.constant 0 : index
    %c0_4 = arith.constant 0 : index
    %3 = vector.load %arg4[%c0_3, %c0_4] : memref<1x101xf32, #tpu.memory_space<vmem>>, vector<1x101xf32>
    %4 = vector.broadcast %3 : vector<1x101xf32> to vector<64x101xf32>
    %5 = arith.addf %2, %4 : vector<64x101xf32>
    %6 = vector.extract_strided_slice %5 {offsets = [0, 0], sizes = [64, 100], strides = [1, 1]} : vector<64x101xf32> to vector<64x100xf32>
    %7 = vector.extract_strided_slice %5 {offsets = [0, 100], sizes = [64, 1], strides = [1, 1]} : vector<64x101xf32> to vector<64x1xf32>
    %cst_5 = arith.constant dense<0xFF800000> : vector<1xf32>
    %8 = vector.multi_reduction <maximumf>, %7, %cst_5 [0] : vector<64x1xf32> to vector<1xf32>
    %9 = vector.shape_cast %8 : vector<1xf32> to vector<1x1xf32>
    %10 = vector.broadcast %9 : vector<1x1xf32> to vector<64x1xf32>
    %11 = arith.subf %7, %10 : vector<64x1xf32>
    %12 = math.exp %11 : vector<64x1xf32>
    %13 = vector.broadcast %12 : vector<64x1xf32> to vector<64x100xf32>
    %14 = arith.mulf %13, %6 : vector<64x100xf32>
    %15 = tpu.concatenate %0, %14, %12 in 1 : vector<64x32xf32>, vector<64x100xf32>, vector<64x1xf32> -> vector<64x133xf32>
    %c0_6 = arith.constant 0 : index
    %c0_7 = arith.constant 0 : index
    %16 = vector.load %arg1[%c0_6, %c0_7] : memref<24x64xf32, #tpu.memory_space<vmem>>, vector<24x64xf32>
    %cst_8 = arith.constant dense<0.000000e+00> : vector<24x133xf32>
    %17 = tpu.matmul %16, %15, %cst_8 {dimension_numbers = #tpu.dot_dimension_numbers<[1], [0], [0], [1], [0, 0, 1, 1], [], []>} : vector<24x64xf32>, vector<64x133xf32>, vector<24x133xf32> -> vector<24x133xf32>
    %18 = vector.extract_strided_slice %17 {offsets = [0, 0], sizes = [8, 32], strides = [1, 1]} : vector<24x133xf32> to vector<8x32xf32>
    %19 = vector.extract_strided_slice %17 {offsets = [8, 0], sizes = [8, 32], strides = [1, 1]} : vector<24x133xf32> to vector<8x32xf32>
    %20 = vector.extract_strided_slice %17 {offsets = [16, 32], sizes = [8, 100], strides = [1, 1]} : vector<24x133xf32> to vector<8x100xf32>
    %21 = vector.extract_strided_slice %17 {offsets = [16, 132], sizes = [8, 1], strides = [1, 1]} : vector<24x133xf32> to vector<8x1xf32>
    %cst_9 = arith.constant 1.000000e-30 : f32
    %22 = vector.broadcast %cst_9 : f32 to vector<8x1xf32>
    %23 = arith.maximumf %21, %22 : vector<8x1xf32>
    %24 = tpu.reciprocal %23 {approx = true} : vector<8x1xf32> -> vector<8x1xf32>
    %25 = vector.broadcast %24 : vector<8x1xf32> to vector<8x100xf32>
    %26 = arith.mulf %20, %25 : vector<8x100xf32>
    %c0_10 = arith.constant 0 : index
    %c0_11 = arith.constant 0 : index
    %27 = vector.load %arg2[%c0_10, %c0_11] : memref<8x24xf32, #tpu.memory_space<vmem>>, vector<8x24xf32>
    %28 = tpu.concatenate %18, %19, %26, %27 in 1 : vector<8x32xf32>, vector<8x32xf32>, vector<8x100xf32>, vector<8x24xf32> -> vector<8x188xf32>
    %c0_12 = arith.constant 0 : index
    %c0_13 = arith.constant 0 : index
    %29 = vector.load %arg5[%c0_12, %c0_13] : memref<188x100xf32, #tpu.memory_space<vmem>>, vector<188x100xf32>
    %cst_14 = arith.constant dense<0.000000e+00> : vector<8x100xf32>
    %30 = tpu.matmul %28, %29, %cst_14 {dimension_numbers = #tpu.dot_dimension_numbers<[1], [0], [0], [1], [0, 0, 1, 1], [], []>} : vector<8x188xf32>, vector<188x100xf32>, vector<8x100xf32> -> vector<8x100xf32>
    %31 = math.tanh %30 : vector<8x100xf32>
    %c0_15 = arith.constant 0 : index
    %c0_16 = arith.constant 0 : index
    %32 = vector.load %arg6[%c0_15, %c0_16] : memref<100x128xf32, #tpu.memory_space<vmem>>, vector<100x128xf32>
    %cst_17 = arith.constant dense<0.000000e+00> : vector<8x128xf32>
    %33 = tpu.matmul %31, %32, %cst_17 {dimension_numbers = #tpu.dot_dimension_numbers<[1], [0], [0], [1], [0, 0, 1, 1], [], []>} : vector<8x100xf32>, vector<100x128xf32>, vector<8x128xf32> -> vector<8x128xf32>
    %c0_18 = arith.constant 0 : index
    %c0_19 = arith.constant 0 : index
    %34 = vector.load %arg7[%c0_18, %c0_19] : memref<8x128xf32, #tpu.memory_space<vmem>>, vector<8x128xf32>
    tpu.vector_store %arg7[%c0_18, %c0_19], %33 {strides = array<i32>} : memref<8x128xf32, #tpu.memory_space<vmem>>, vector<8x128xf32>,
    return
  }
}

</mosaic_0001>

<bundles_post_ra>
// kernel: nonlinear_re_forward.1
= control target key start
LH: loop header
LB: loop body
LE: loop exit
PB: predicated region body
PF: predicated region fallthrough
CT: control target
= control target key end

     0   :  { %vm42_vm0 = vcmask 261120   ;;  %v575_v21 = vmov 100   ;;  %vm108_vm1 = vcmask 827168   ;;  %vm266_vm2 = vcmask 31744   ;;  %s900_s3 = inlined_call_operand.vmem [shape: f32[32,101], index: 3, kind: input, shape index: {}]   ;;  %s901_s0 = inlined_call_operand.vmem [shape: f32[64,32], index: 0, kind: input, shape index: {}]   ;;  %s902_s4 = inlined_call_operand.vmem [shape: f32[1,101], index: 4, kind: input, shape index: {}]   ;;  %s903_s1 = inlined_call_operand.vmem [shape: f32[24,64], index: 1, kind: input, shape index: {}]   ;;  %s904_s2 = inlined_call_operand.vmem [shape: f32[8,24], index: 2, kind: input, shape index: {}]   ;;  %s905_s5 = inlined_call_operand.vmem [shape: f32[188,100], index: 5, kind: input, shape index: {}]   ;;  %s906_s6 = inlined_call_operand.vmem [shape: f32[100,128], index: 6, kind: input, shape index: {}]   ;;  %s907_s7 = inlined_call_operand.vmem [shape: f32[8,128], index: 7, kind: output, shape index: {}]  }
   0x1   :  { %v37_v0 = vld [vmem:[%s900_s3 + $0x18] sm:$0xff]  ;;  %v36_v1 = vld [vmem:[%s900_s3 + $0x10] sm:$0xff]  ;;  %v35_v2 = vld [vmem:[%s900_s3 + $0x8] sm:$0xff]  ;;  %511 = vset.pattern.permute.xlu2 %v575_v21  ;;  %510 = vset.pattern.permute.xlu1 %v575_v21  ;;  %vm278_vm3 = vcmask 523264   ;;  %vm397_vm4 = vcmask 1043456   ;;  %vm367_vm5 = vcmask 293888  }
   0x2   :  { %79 = vmatpush.msra.mxu0 %v37_v0  ;;  %v34_v3 = vld [vmem:[%s900_s3] sm:$0xff]  ;;  %v641_v5 = vld [vmem:[%s901_s0 + $0x8] sm:$0xff]  ;;  %v648_v6 = vld [vmem:[%s901_s0 + $0x10] sm:$0xff]  ;;  %509 = vset.pattern.permute.xlu0 %v575_v21  ;;  %s578_s3 = smov 36   ;;  %vm393_vm6 = vcmask 490496   ;;  %vm455_vm7 = vcmask 818176  }
   0x3   :  { %v634_v4 = vld [vmem:[%s901_s0] sm:$0xff]  ;;  %v655_v7 = vld [vmem:[%s901_s0 + $0x18] sm:$0xff]  ;;  %v669_v9 = vld [vmem:[%s901_s0 + $0x28] sm:$0xff] }
   0x4   :  { %80 = vmatpush.msra.mxu0 %v36_v1  ;;  %v662_v8 = vld [vmem:[%s901_s0 + $0x20] sm:$0xff]  ;;  %v676_v10 = vld [vmem:[%s901_s0 + $0x30] sm:$0xff]  ;;  %v683_v11 = vld [vmem:[%s901_s0 + $0x38] sm:$0xff]  ;;  %s576_s0 = smov 32  }
   0x5   :  { %v554_v19 = vld [vmem:[%s902_s4] ss:$0 sm:$0xff] }
   0x6   :  { %81 = vmatpush.msra.mxu0 %v35_v2 }
   0x8   :  { %82 = vmatpush.msra.mxu0 %v34_v3 }
   0x9   :  { %487 = vmatmul.msk.f32.vlgmr.msra.gmra.mxu0 %vm42_vm0, %v634_v4 }
  0x11   :  { %488 = vmatmul.msk.f32.gmra.mxu0 %vm42_vm0, %v641_v5 }
  0x19   :  { %489 = vmatmul.msk.f32.gmra.mxu0 %vm42_vm0, %v648_v6 }
  0x21   :  { %490 = vmatmul.msk.f32.gmra.mxu0 %vm42_vm0, %v655_v7 }
  0x29   :  { %491 = vmatmul.msk.f32.gmra.mxu0 %vm42_vm0, %v662_v8 }
  0x31   :  { %492 = vmatmul.msk.f32.gmra.mxu0 %vm42_vm0, %v669_v9 }
  0x39   :  { %493 = vmatmul.msk.f32.gmra.mxu0 %vm42_vm0, %v676_v10 }
  0x41   :  { %494 = vmatmul.msk.f32.gmra.mxu0 %vm42_vm0, %v683_v11 }
  0x86   :  { %v84_v12 = vpop.f32.mrf.mxu0 }
  0x87   :  { %v698_v25 = vadd.f32 %v554_v19, %v84_v12 }
  0x89   :  { %v109_v35 = vsel %vm108_vm1, %v698_v25, -inf }
  0x8e   :  { %v87_v13 = vpop.f32.mrf.mxu0 }
  0x8f   :  { %v692_v22 = vadd.f32 %v554_v19, %v87_v13 }
  0x91   :  { %v110_v30 = vsel %vm108_vm1, %v692_v22, -inf }
  0x96   :  { %v90_v14 = vpop.f32.mrf.mxu0 }
  0x97   :  { %v700_v26 = vadd.f32 %v554_v19, %v90_v14 }
  0x99   :  { %v111_v36 = vsel %vm108_vm1, %v700_v26, -inf }
  0x9e   :  { %v93_v15 = vpop.f32.mrf.mxu0 }
  0x9f   :  { %v702_v27 = vadd.f32 %v554_v19, %v93_v15 }
  0xa1   :  { %v112_v37 = vsel %vm108_vm1, %v702_v27, -inf }
  0xa6   :  { %v96_v16 = vpop.f32.mrf.mxu0 }
  0xa7   :  { %v694_v23 = vadd.f32 %v554_v19, %v96_v16 }
  0xa9   :  { %v113_v31 = vsel %vm108_vm1, %v694_v23, -inf }
  0xaa   :  { %v114_v39 = vmax.f32 %v109_v35, %v113_v31 }
  0xae   :  { %v99_v17 = vpop.f32.mrf.mxu0 }
  0xaf   :  { %v690_v20 = vadd.f32 %v554_v19, %v99_v17 }
  0xb1   :  { %v115_v28 = vsel %vm108_vm1, %v690_v20, -inf }
  0xb2   :  { %v116_v34 = vmax.f32 %v110_v30, %v115_v28 }
  0xb4   :  { %v121_v42 = vmax.f32 %v114_v39, %v116_v34 }
  0xb6   :  { %v102_v18 = vpop.f32.mrf.mxu0 }
  0xb7   :  { %v696_v24 = vadd.f32 %v554_v19, %v102_v18 }
  0xb9   :  { %v117_v32 = vsel %vm108_vm1, %v696_v24, -inf }
  0xba   :  { %v118_v40 = vmax.f32 %v111_v36, %v117_v32 }
  0xbe   :  { %v105_v29 = vpop.f32.mrf.mxu0 }
  0xbf   :  { %v106_v33 = vadd.f32 %v554_v19, %v105_v29 }
  0xc1   :  { %v119_v38 = vsel %vm108_vm1, %v106_v33, -inf }
  0xc2   :  { %v120_v41 = vmax.f32 %v112_v37, %v119_v38 }
  0xc4   :  { %v122_v43 = vmax.f32 %v118_v40, %v120_v41 }
  0xc6   :  { %v123_v44 = vmax.f32 %v121_v42, %v122_v43 }
  0xc8   :  { %v124_v45 = vrot.slane %v123_v44, 4 }
  0xca   :  { %v125_v46 = vmax.f32 %v123_v44, %v124_v45 }
  0xcc   :  { %v126_v47 = vrot.slane %v125_v46, 2 }
  0xce   :  { %v127_v48 = vmax.f32 %v125_v46, %v126_v47 }
  0xd0   :  { %v128_v49 = vrot.slane %v127_v48, 1 }
  0xd2   :  { %v129_v50 = vmax.f32 %v127_v48, %v128_v49 }
  0xd4   :  { %v137_v51 = vsub.f32 %v106_v33, %v129_v50  ;;  %v135_v52 = vsub.f32 %v690_v20, %v129_v50  ;;  %v133_v53 = vsub.f32 %v702_v27, %v129_v50  ;;  %v136_v57 = vsub.f32 %v696_v24, %v129_v50 }
  0xd5   :  { %v134_v58 = vsub.f32 %v694_v23, %v129_v50  ;;  %v132_v59 = vsub.f32 %v700_v26, %v129_v50  ;;  %v131_v2 = vsub.f32 %v692_v22, %v129_v50  ;;  %v130_v3 = vsub.f32 %v698_v25, %v129_v50 }
  0xd6   :  { %v152_v54 = vmul.f32 1.442695, %v137_v51  ;;  %v148_v55 = vmul.f32 1.442695, %v135_v52  ;;  %v144_v56 = vmul.f32 1.442695, %v133_v53 }
  0xd7   :  { %v150_v60 = vmul.f32 1.442695, %v136_v57  ;;  %v146_v61 = vmul.f32 1.442695, %v134_v58  ;;  %v142_v63 = vmul.f32 1.442695, %v132_v59 }
  0xd8   :  { %555 = vpow2.f32 %v152_v54  ;;  %v140_v12 = vmul.f32 1.442695, %v131_v2  ;;  %v138_v13 = vmul.f32 1.442695, %v130_v3 }
  0xd9   :  { %557 = vpow2.f32 %v148_v55 }
  0xda   :  { %559 = vpow2.f32 %v144_v56 }
  0xdb   :  { %561 = vpow2.f32 %v150_v60 }
  0xdc   :  { %563 = vpow2.f32 %v146_v61 }
  0xdd   :  { %565 = vpow2.f32 %v142_v63 }
  0xde   :  { %v556_v62 = vpop.eup %555  ;;  %567 = vpow2.f32 %v140_v12 }
  0xdf   :  { %v558_v0 = vpop.eup %557  ;;  %191 = vperm.xlu0 %509, %v556_v62   ;;  %569 = vpow2.f32 %v138_v13 }
  0xe0   :  { %v560_v1 = vpop.eup %559  ;;  %181 = vperm.xlu1 %510, %v558_v0  }
  0xe1   :  { %171 = vperm.xlu2 %511, %v560_v1   ;;  %v562_v14 = vpop.eup %561 }
  0xe2   :  { %v564_v15 = vpop.eup %563 }
  0xe3   :  { %v566_v16 = vpop.eup %565 }
  0xe4   :  { %v568_v17 = vpop.eup %567 }
  0xe5   :  { %v570_v18 = vpop.eup %569 }
  0xe7   :  { %186 = vperm.xlu0 %509, %v562_v14  }
  0xe8   :  { %176 = vperm.xlu1 %510, %v564_v15  }
  0xe9   :  { %166 = vperm.xlu2 %511, %v566_v16  }
  0xef   :  { %161 = vperm.xlu0 %509, %v568_v17  }
  0xf0   :  { %156 = vperm.xlu1 %510, %v570_v18  }
 0x13b   :  { %v172_v19 = vpop.permute.xlu2 %171 }
 0x143   :  { %v167_v34 = vpop.permute.xlu2 %166 }
 0x144   :  { %v196_v35 = vmul.f32 %v167_v34, %v700_v26 }
 0x146   :  { %v537_v40 = vpack.i.bf16 %v566_v16, %v196_v35 }
 0x151   :  { %v192_v21 = vpop.permute.xlu0 %191 }
 0x152   :  { %v201_v28 = vmul.f32 %v192_v21, %v106_v33  ;;  %v182_v29 = vpop.permute.xlu1 %181  ;;  %v275_v21 = vld [vmem:[%s903_s1] sm:$0xff] }
 0x153   :  { %v199_v30 = vmul.f32 %v182_v29, %v690_v20  ;;  %v197_v20 = vmul.f32 %v172_v19, %v702_v27  ;;  %v577_v29 = vmov 4  }
 0x154   :  { %v512_v31 = vpack.i.bf16 %v556_v62, %v201_v28  ;;  %552 = vset.pattern.permute.xlu1 %v577_v29  ;;  %553 = vset.pattern.permute.xlu0 %v577_v29 }
 0x155   :  { %v522_v32 = vpack.i.bf16 %v558_v0, %v199_v30  ;;  %v532_v43 = vpack.i.bf16 %v560_v1, %v197_v20  ;;  %v391_v20 = vld [vmem:[%s905_s5 + $0xb0] sm:$0xff] }
 0x156   :  { %513 = vrot.lane.b32.xlu2 %v512_v31, %s576_s0 }
 0x157   :  { %523 = vrot.lane.b32.xlu1 %v522_v32, %s576_s0 }
 0x159   :  { %v187_v36 = vpop.permute.xlu0 %186 }
 0x15a   :  { %v200_v37 = vmul.f32 %v187_v36, %v696_v24  ;;  %v177_v38 = vpop.permute.xlu1 %176 }
 0x15b   :  { %v198_v39 = vmul.f32 %v177_v38, %v694_v23  ;;  %v347_v38 = vld [vmem:[%s904_s2] sm:$0xff] }
 0x15c   :  { %v517_v33 = vpack.i.bf16 %v562_v14, %v200_v37 }
 0x15d   :  { %v527_v41 = vpack.i.bf16 %v564_v15, %v198_v39  ;;  %v384_v39 = vld [vmem:[%s905_s5 + $0x78] sm:$0xff] }
 0x15e   :  { %518 = vrot.lane.b32.xlu0 %v517_v33, %s576_s0  ;;  %v383_v33 = vld [vmem:[%s905_s5 + $0x70] sm:$0xff]  ;;  %401 = vmatpush.msra.mxu3 %v384_v39 }
 0x15f   :  { %528 = vrot.lane.b32.xlu2 %v527_v41, %s576_s0  ;;  %538 = vrot.lane.b32.xlu1 %v537_v40, %s576_s0  ;;  %v382_v40 = vld [vmem:[%s905_s5 + $0x68] sm:$0xff]  ;;  %v392_v41 = vld [vmem:[%s905_s5 + $0xb8] sm:$0xf] }
 0x160   :  { %402 = vmatpush.msra.mxu3 %v383_v33 }
 0x161   :  { %v162_v42 = vpop.permute.xlu0 %161 }
 0x162   :  { %v195_v26 = vmul.f32 %v162_v42, %v692_v22  ;;  %v157_v24 = vpop.permute.xlu1 %156  ;;  %v381_v42 = vld [vmem:[%s905_s5 + $0x60] sm:$0xff]  ;;  %403 = vmatpush.msra.mxu3 %v382_v40 }
 0x163   :  { %v194_v23 = vmul.f32 %v157_v24, %v698_v25  ;;  %v379_v24 = vld [vmem:[%s905_s5 + $0x50] sm:$0xff] }
 0x164   :  { %v542_v44 = vpack.i.bf16 %v568_v17, %v195_v26  ;;  %v390_v26 = vld [vmem:[%s905_s5 + $0xa8] sm:$0xff]  ;;  %404 = vmatpush.msra.mxu3 %v381_v42 }
 0x165   :  { %v547_v45 = vpack.i.bf16 %v570_v18, %v194_v23  ;;  %v388_v23 = vld [vmem:[%s905_s5 + $0x98] sm:$0xff] }
 0x166   :  { %533 = vrot.lane.b32.xlu0 %v532_v43, %s576_s0  ;;  %v380_v43 = vld [vmem:[%s905_s5 + $0x58] sm:$0xff] }
 0x167   :  { %543 = vrot.lane.b32.xlu2 %v542_v44, %s576_s0  ;;  %v389_v44 = vld [vmem:[%s905_s5 + $0xa0] sm:$0xff]  ;;  %405 = vmatpush.msra.mxu3 %v380_v43 }
 0x169   :  { %406 = vmatpush.msra.mxu3 %v379_v24 }
 0x16e   :  { %548 = vrot.lane.b32.xlu0 %v547_v45, %s576_s0  ;;  %v378_v45 = vld [vmem:[%s905_s5 + $0x48] sm:$0xff] }
 0x16f   :  { %407 = vmatpush.msra.mxu3 %v378_v45 }
 0x1b0   :  { %v514_v46 = vpop.permute.xlu2 %513 }
 0x1b1   :  { %v516_v47 = vunpack.i.h.bf16 %v514_v46  ;;  %v515_v48 = vunpack.i.l.bf16 %v514_v46  ;;  %v387_v46 = vld [vmem:[%s905_s5 + $0x90] sm:$0xff] }
 0x1b3   :  { %v265_v27 = vsel %vm42_vm0, %v683_v11, %v515_v48  ;;  %v274_v22 = vsel %vm266_vm2, %v515_v48, %v516_v47  ;;  %v377_v47 = vld [vmem:[%s905_s5 + $0x40] sm:$0xff]  ;;  %v376_v48 = vld [vmem:[%s905_s5 + $0x38] sm:$0xff] }
 0x1b4   :  { %296 = vmatpush.msra.mxu1 %v265_v27  ;;  %322 = vmatpush.msra.mxu2 %v274_v22  ;;  %v375_v27 = vld [vmem:[%s905_s5 + $0x30] sm:$0xff]  ;;  %v374_v22 = vld [vmem:[%s905_s5 + $0x28] sm:$0xff] }
 0x1b5   :  { %408 = vmatpush.msra.mxu3 %v377_v47 }
 0x1b7   :  { %409 = vmatpush.msra.mxu3 %v376_v48 }
 0x1b9   :  { %v529_v50 = vpop.permute.xlu2 %528  ;;  %410 = vmatpush.msra.mxu3 %v375_v27 }
 0x1ba   :  { %v531_v55 = vunpack.i.h.bf16 %v529_v50  ;;  %v530_v56 = vunpack.i.l.bf16 %v529_v50  ;;  %v372_v50 = vld [vmem:[%s905_s5 + $0x18] sm:$0xff] }
 0x1bb   :  { %411 = vmatpush.msra.mxu3 %v374_v22 }
 0x1bc   :  { %v262_v61 = vsel %vm42_vm0, %v662_v8, %v530_v56  ;;  %v271_v62 = vsel %vm266_vm2, %v530_v56, %v531_v55  ;;  %v386_v56 = vld [vmem:[%s905_s5 + $0x88] sm:$0xff] }
 0x1c1   :  { %v544_v63 = vpop.permute.xlu2 %543 }
 0x1c2   :  { %v546_v12 = vunpack.i.h.bf16 %v544_v63 }
 0x1c9   :  { %v524_v49 = vpop.permute.xlu1 %523 }
 0x1ca   :  { %v526_v52 = vunpack.i.h.bf16 %v524_v49  ;;  %v525_v53 = vunpack.i.l.bf16 %v524_v49  ;;  %v373_v49 = vld [vmem:[%s905_s5 + $0x20] sm:$0xff] }
 0x1cb   :  { %412 = vmatpush.msra.mxu3 %v373_v49 }
 0x1cc   :  { %v263_v11 = vsel %vm42_vm0, %v669_v9, %v525_v53  ;;  %v272_v59 = vsel %vm266_vm2, %v525_v53, %v526_v52  ;;  %v545_v9 = vunpack.i.l.bf16 %v544_v63  ;;  %v370_v52 = vld [vmem:[%s905_s5 + $0x8] sm:$0xff] }
 0x1cd   :  { %413 = vmatpush.msra.mxu3 %v372_v50 }
 0x1ce   :  { %v259_v16 = vsel %vm42_vm0, %v641_v5, %v545_v9  ;;  %v268_v17 = vsel %vm266_vm2, %v545_v9, %v546_v12  ;;  %v276_v5 = vld [vmem:[%s903_s1 + $0x8] sm:$0xff] }
 0x1d0   :  { %v519_v51 = vpop.permute.xlu0 %518 }
 0x1d1   :  { %v521_v25 = vunpack.i.h.bf16 %v519_v51  ;;  %v520_v54 = vunpack.i.l.bf16 %v519_v51  ;;  %v539_v60 = vpop.permute.xlu1 %538  ;;  %v371_v51 = vld [vmem:[%s905_s5 + $0x10] sm:$0xff] }
 0x1d2   :  { %v540_v1 = vunpack.i.l.bf16 %v539_v60  ;;  %414 = vmatpush.msra.mxu3 %v371_v51 }
 0x1d3   :  { %v264_v57 = vsel %vm42_vm0, %v676_v10, %v520_v54  ;;  %v273_v58 = vsel %vm266_vm2, %v520_v54, %v521_v25  ;;  %v541_v10 = vunpack.i.h.bf16 %v539_v60  ;;  %v452_v60 = vld [vmem:[%s906_s6 + $0x50] sm:$0xff] }
 0x1d4   :  { %297 = vmatpush.msra.mxu1 %v264_v57  ;;  %323 = vmatpush.msra.mxu2 %v273_v58  ;;  %v260_v8 = vsel %vm42_vm0, %v648_v6, %v540_v1  ;;  %v369_v57 = vld [vmem:[%s905_s5] sm:$0xff] }
 0x1d5   :  { %v269_v15 = vsel %vm266_vm2, %v540_v1, %v541_v10  ;;  %415 = vmatpush.msra.mxu3 %v370_v52  ;;  %v385_v58 = vld [vmem:[%s905_s5 + $0x80] sm:$0xff] }
 0x1d6   :  { %298 = vmatpush.msra.mxu1 %v263_v11  ;;  %324 = vmatpush.msra.mxu2 %v272_v59  ;;  %v454_v11 = vld [vmem:[%s906_s6 + $0x60] sm:$0xf]  ;;  %v453_v59 = vld [vmem:[%s906_s6 + $0x58] sm:$0xff] }
 0x1d7   :  { %416 = vmatpush.msra.mxu3 %v369_v57 }
 0x1d8   :  { %v534_v0 = vpop.permute.xlu0 %533  ;;  %299 = vmatpush.msra.mxu1 %v262_v61  ;;  %325 = vmatpush.msra.mxu2 %v271_v62  ;;  %v451_v61 = vld [vmem:[%s906_s6 + $0x48] sm:$0xff]  ;;  %v450_v62 = vld [vmem:[%s906_s6 + $0x40] sm:$0xff] }
 0x1d9   :  { %v536_v2 = vunpack.i.h.bf16 %v534_v0  ;;  %v535_v3 = vunpack.i.l.bf16 %v534_v0 }
 0x1db   :  { %v261_v13 = vsel %vm42_vm0, %v655_v7, %v535_v3  ;;  %v270_v14 = vsel %vm266_vm2, %v535_v3, %v536_v2 }
 0x1dc   :  { %300 = vmatpush.msra.mxu1 %v261_v13  ;;  %326 = vmatpush.msra.mxu2 %v270_v14  ;;  %v449_v13 = vld [vmem:[%s906_s6 + $0x38] sm:$0xff]  ;;  %v448_v14 = vld [vmem:[%s906_s6 + $0x30] sm:$0xff] }
 0x1de   :  { %301 = vmatpush.msra.mxu1 %v260_v8  ;;  %327 = vmatpush.msra.mxu2 %v269_v15  ;;  %v447_v8 = vld [vmem:[%s906_s6 + $0x28] sm:$0xff]  ;;  %v446_v15 = vld [vmem:[%s906_s6 + $0x20] sm:$0xff] }
 0x1e0   :  { %v549_v18 = vpop.permute.xlu0 %548  ;;  %302 = vmatpush.msra.mxu1 %v259_v16  ;;  %328 = vmatpush.msra.mxu2 %v268_v17  ;;  %v445_v16 = vld [vmem:[%s906_s6 + $0x18] sm:$0xff]  ;;  %v444_v17 = vld [vmem:[%s906_s6 + $0x10] sm:$0xff] }
 0x1e1   :  { %v551_v7 = vunpack.i.h.bf16 %v549_v18  ;;  %v550_v19 = vunpack.i.l.bf16 %v549_v18  ;;  %v443_v18 = vld [vmem:[%s906_s6 + $0x8] sm:$0xff] }
 0x1e3   :  { %v258_v6 = vsel %vm42_vm0, %v634_v4, %v550_v19  ;;  %v267_v28 = vsel %vm266_vm2, %v550_v19, %v551_v7  ;;  %v277_v4 = vld [vmem:[%s903_s1 + $0x10] sm:$0xff]  ;;  %v442_v7 = vld [vmem:[%s906_s6] sm:$0xff] }
 0x1e4   :  { %303 = vmatpush.msra.mxu1 %v258_v6  ;;  %329 = vmatpush.msra.mxu2 %v267_v28 }
 0x1e5   :  { %498 = vmatmul.msk.f32.vlgmr.msra.gmra.mxu2 %vm278_vm3, %v275_v21  ;;  %495 = vmatmul.msk.f32.vlgmr.msra.gmra.mxu1 %vm278_vm3, %v275_v21 }
 0x1e6   :  { %501 = vmatpush.msk.msrb.mxu1 %vm397_vm4, %v392_v41  ;;  %503 = vmatpush.msk.msrb.mxu2 %vm397_vm4, %v454_v11 }
 0x1e8   :  { %430 = vmatpush.msrb.mxu1 %v391_v20  ;;  %466 = vmatpush.msrb.mxu2 %v453_v59 }
 0x1ea   :  { %431 = vmatpush.msrb.mxu1 %v390_v26  ;;  %467 = vmatpush.msrb.mxu2 %v452_v60 }
 0x1ec   :  { %432 = vmatpush.msrb.mxu1 %v389_v44  ;;  %468 = vmatpush.msrb.mxu2 %v451_v61 }
 0x1ed   :  { %499 = vmatmul.msk.f32.gmra.mxu2 %vm278_vm3, %v276_v5  ;;  %496 = vmatmul.msk.f32.gmra.mxu1 %vm278_vm3, %v276_v5 }
 0x1ee   :  { %433 = vmatpush.msrb.mxu1 %v388_v23  ;;  %469 = vmatpush.msrb.mxu2 %v450_v62 }
 0x1f0   :  { %434 = vmatpush.msrb.mxu1 %v387_v46  ;;  %470 = vmatpush.msrb.mxu2 %v449_v13 }
 0x1f2   :  { %435 = vmatpush.msrb.mxu1 %v386_v56  ;;  %471 = vmatpush.msrb.mxu2 %v448_v14 }
 0x1f4   :  { %436 = vmatpush.msrb.mxu1 %v385_v58  ;;  %472 = vmatpush.msrb.mxu2 %v447_v8 }
 0x1f5   :  { %500 = vmatmul.msk.f32.gmra.mxu2 %vm278_vm3, %v277_v4  ;;  %497 = vmatmul.msk.f32.gmra.mxu1 %vm278_vm3, %v277_v4 }
 0x1f6   :  { %473 = vmatpush.msrb.mxu2 %v446_v15 }
 0x1f8   :  { %474 = vmatpush.msrb.mxu2 %v445_v16 }
 0x1fa   :  { %475 = vmatpush.msrb.mxu2 %v444_v17 }
 0x1fc   :  { %476 = vmatpush.msrb.mxu2 %v443_v18 }
 0x1fe   :  { %477 = vmatpush.msrb.mxu2 %v442_v7 }
 0x262   :  { %v772_v30 = vpop.f32.mrf.mxu1 }
 0x268   :  { %v331_v31 = vpop.f32.mrf.mxu2 }
 0x26a   :  { %v308_v32 = vpop.f32.mrf.mxu1 }
 0x26b   :  { %349 = vrot.lane.b32.xlu2 %v308_v32, %s576_s0 }
 0x270   :  { %v333_v34 = vpop.f32.mrf.mxu2 }
 0x272   :  { %v311_v53 = vpop.f32.mrf.mxu1 }
 0x273   :  { %362 = vrot.lane.b32.xlu2 %v347_v38, %s578_s3 }
 0x278   :  { %v335_v35 = vpop.f32.mrf.mxu2 }
 0x279   :  { %v338_v36 = vmax.f32 %v335_v35, 1e-30 }
 0x27b   :  { %571 = vrcp.f32 %v338_v36 }
 0x281   :  { %v572_v37 = vpop.eup %571 }
 0x282   :  { %342 = vperm.xlu1 %552, %v572_v37  }
 0x2c5   :  { %v350_v63 = vpop.permute.xlu2 %349 }
 0x2c6   :  { %v365_v10 = vsel %vm42_vm0, %v772_v30, %v350_v63 }
 0x2cd   :  { %v363_v0 = vpop.permute.xlu2 %362 }
 0x2f4   :  { %v343_v25 = vpop.permute.xlu1 %342 }
 0x2f5   :  { %v346_v54 = vmul.f32 %v343_v25, %v335_v35  ;;  %v345_v55 = vmul.f32 %v343_v25, %v311_v53 }
 0x2f7   :  { %356 = vrot.lane.b32.xlu1 %v346_v54, %s576_s0  ;;  %354 = vrot.lane.b32.xlu0 %v345_v55, %s576_s0 }
 0x369   :  { %v357_v1 = vpop.permute.xlu1 %356  ;;  %v355_v2 = vpop.permute.xlu0 %354 }
 0x36a   :  { %v358_v3 = vsel %vm42_vm0, %v355_v2, %v357_v1  ;;  %v366_v12 = vsel %vm278_vm3, %v365_v10, %v355_v2 }
 0x36b   :  { %v368_v9 = vsel %vm367_vm5, %v358_v3, %v363_v0  ;;  %417 = vmatmul.f32.vlgmr.msra.gmra.mxu3 %v366_v12 }
 0x36c   :  { %502 = vmatmul.msk.f32.vlgmr.msrb.gmra.mxu1 %vm393_vm6, %v368_v9 }
 0x3e9   :  { %v438_v19 = vpop.f32.mrf.mxu1 }
 0x3ee   :  { %v418_v21 = vpop.f32.mrf.mxu3 }
 0x3ef   :  { %v439_v6 = vadd.f32 %v438_v19, %v418_v21 }
 0x3f1   :  { %573 = vtanh.f32 %v439_v6 }
 0x3f7   :  { %v574_v28 = vpop.eup %573 }
 0x3f8   :  { %504 = vmatmul.msk.f32.vlgmr.msrb.gmra.mxu2 %vm455_vm7, %v574_v28 }
 0x47b   :  { %v479_v5 = vpop.f32.mrf.mxu2 }
 0x47c   :  { %482 = vst [vmem:[%s907_s7] sm:$0xff] %v479_v5 }

</bundles_post_ra>
